<compile_context>
chip_gen: v7x
topology: tpu7x:2x2x1
jax: 0.10.0
libtpu: 0.0.40
codegen_flags: <defaults>
</compile_context>

<pallas_src>
import jax
import jax.numpy as jnp
from jax.experimental import pallas as pl
from jax.experimental.pallas import tpu as pltpu

VOCAB = 2
HIDDEN = 2
EPS = 1e-5

LANE = 256                 # lane-alignment granularity (even, multiple of 128)
MAX_BLK = 256 * 1024       # max lanes per grid step (= 128K tokens); ~2.5 MiB of
                           # double-buffered tok+out per step, leaving ample VMEM
                           # headroom on v5e/v6e/v7x even with un-fused temporaries.
P_ROWS = 16                # packed-parameter slab rows (multiple of 8)
P_COLS = 128               # packed-parameter slab cols (lane width)


def _round_up(x, m):
    return ((x + m - 1) // m) * m


# ---------------------------------------------------------------------------
# Kernel
# ---------------------------------------------------------------------------
def dummy_model_kernel(tok_ref, p_ref, out_ref):
    H, V = HIDDEN, VOCAB

    # ---- static slices of the single packed parameter slab (one DMA) --------
    embT = p_ref[0 * H:1 * H, 0:V]            # (H, V)   emb.T
    w1 = p_ref[1 * H:2 * H, 0:H]              # (H, H)   PyTorch (out, in) layout
    b1 = p_ref[2 * H:3 * H, 0:1]              # (H, 1)
    g1 = p_ref[2 * H:3 * H, 1:2]              # (H, 1)
    be1 = p_ref[2 * H:3 * H, 2:3]             # (H, 1)
    w2 = p_ref[3 * H:4 * H, 0:H]
    b2 = p_ref[4 * H:5 * H, 0:1]
    g2 = p_ref[4 * H:5 * H, 1:2]
    be2 = p_ref[4 * H:5 * H, 2:3]
    wh = p_ref[5 * H:6 * H, 0:H]
    bh = p_ref[6 * H:7 * H, 0:1]

    # ---- tiny (H, V) pipeline, VPU only (no MXU push/pop for 2-wide K) ------
    def linear(t, w, b):
        # t: (H, V) hidden-state columns per vocab id; y = W @ t + b
        acc = b                                # (H, 1), broadcasts along lanes
        for k in range(H):                     # unrolled, H == 2
            acc = acc + w[:, k:k + 1] * t[k:k + 1, :]   # (H,1)*(1,V) -> (H,V)
        return acc

    def layernorm(t, g, be):
        # Reduction over the hidden axis = sublane rows; H == 2 -> plain adds.
        s = t[0:1, :]
        for i in range(1, H):
            s = s + t[i:i + 1, :]
        mean = s * (1.0 / H)                   # (1, V)
        d = t - mean                           # (H, V)
        s2 = d[0:1, :] * d[0:1, :]
        for i in range(1, H):
            s2 = s2 + d[i:i + 1, :] * d[i:i + 1, :]
        var = s2 * (1.0 / H)                   # biased variance (PyTorch LN)
        inv = jax.lax.rsqrt(var + EPS)         # (1, V) -> EUP
        return d * inv * g + be                # (H,V)*(1,V)*(H,1)+(H,1)

    t = embT                                   # embedding rows, transposed
    t = layernorm(linear(t, w1, b1), g1, be1)  # block 1
    t = layernorm(linear(t, w2, b2), g2, be2)  # block 2
    t = linear(t, wh, bh)                      # head -> (H, V) logits table

    # ---- interleaved per-token output: lane j holds logit h=(j%2) of token j//2
    t00 = t[0:1, 0:1]
    t01 = t[0:1, 1:2]
    t10 = t[1:2, 0:1]
    t11 = t[1:2, 1:2]

    blk = out_ref.shape[1]
    # Lane parity (block size is even & block offsets are multiples of it, so
    # local parity == global parity).
    par = jax.lax.broadcasted_iota(jnp.int32, (1, blk), 1) & 1
    p_f = par.astype(jnp.float32)
    a0 = t00 + p_f * (t10 - t00)               # logit(parity, vocab=0) per lane
    a1 = t01 + p_f * (t11 - t01)               # logit(parity, vocab=1) per lane

    # Token ids are 0/1 (int8, duplicated once per hidden lane); ids outside
    # {0,1} are not supported (no bounds check) -- VOCAB == 2 contract.
    tok_f = tok_ref[...].astype(jnp.float32)   # (1, blk)
    out_ref[...] = (a0 + tok_f * (a1 - a0)).astype(out_ref.dtype)


# ---------------------------------------------------------------------------
# Parameter packing: all 11 tensors -> one (16, 128) f32 slab (one DMA)
# ---------------------------------------------------------------------------
def pack_params(params):
    H = HIDDEN
    p = jnp.zeros((P_ROWS, P_COLS), jnp.float32)
    p = p.at[0 * H:1 * H, 0:VOCAB].set(params["emb"].T)
    p = p.at[1 * H:2 * H, 0:H].set(params["w1"])
    p = p.at[2 * H:3 * H, 0].set(params["b1"])
    p = p.at[2 * H:3 * H, 1].set(params["g1"])
    p = p.at[2 * H:3 * H, 2].set(params["be1"])
    p = p.at[3 * H:4 * H, 0:H].set(params["w2"])
    p = p.at[4 * H:5 * H, 0].set(params["b2"])
    p = p.at[4 * H:5 * H, 1].set(params["g2"])
    p = p.at[4 * H:5 * H, 2].set(params["be2"])
    p = p.at[5 * H:6 * H, 0:H].set(params["wh"])
    p = p.at[6 * H:7 * H, 0].set(params["bh"])
    return p


def init_params(key):
    """Deterministic synthetic parameters matching the PyTorch module's shapes."""
    ks = jax.random.split(key, 7)
    return {
        "emb": jax.random.normal(ks[0], (VOCAB, HIDDEN), jnp.float32),
        # nn.Linear stores weight as (out, in); keep that convention.
        "w1": jax.random.normal(ks[1], (HIDDEN, HIDDEN), jnp.float32) * 0.5,
        "b1": jax.random.normal(ks[2], (HIDDEN,), jnp.float32) * 0.1,
        "g1": jnp.ones((HIDDEN,), jnp.float32),
        "be1": jnp.zeros((HIDDEN,), jnp.float32),
        "w2": jax.random.normal(ks[3], (HIDDEN, HIDDEN), jnp.float32) * 0.5,
        "b2": jax.random.normal(ks[4], (HIDDEN,), jnp.float32) * 0.1,
        "g2": jnp.ones((HIDDEN,), jnp.float32),
        "be2": jnp.zeros((HIDDEN,), jnp.float32),
        "wh": jax.random.normal(ks[5], (HIDDEN, HIDDEN), jnp.float32) * 0.5,
        "bh": jax.random.normal(ks[6], (HIDDEN,), jnp.float32) * 0.1,
    }


# ---------------------------------------------------------------------------
# Wrapper
# ---------------------------------------------------------------------------
def dummy_model_forward(x_tokens, params):
    """x_tokens: (B, S) int in [0, VOCAB). Returns (B, S, HIDDEN) float32."""
    B, S = x_tokens.shape
    N = B * S
    L = 2 * N                                   # one lane per (token, hidden) pair

    # Block sizing: lane-aligned; >=2 blocks when there is enough work so the
    # "parallel" grid axis actually shards across v7x's two TensorCores; capped
    # at MAX_BLK so blocks stay well inside the scoped-VMEM budget everywhere.
    l_min = max(_round_up(L, LANE), LANE)
    if l_min <= 2 * LANE:
        blk = l_min
    else:
        blk = min(MAX_BLK, _round_up(-(-l_min // 2), LANE))
    l_pad = _round_up(l_min, blk)               # blk always divides l_pad
    n_blocks = l_pad // blk

    # int8 token ids (values 0/1), duplicated once per hidden lane so the kernel
    # can emit the final interleaved layout directly (no output transpose).
    ids = x_tokens.reshape(-1).astype(jnp.int8)
    ids2 = jnp.stack([ids, ids], axis=-1).reshape(-1)        # tok0,tok0,tok1,tok1,...
    tok = jnp.zeros((1, l_pad), jnp.int8).at[0, :L].set(ids2)

    p = pack_params(params)

    cost = pl.CostEstimate(
        flops=int(6 * l_pad + 64 * n_blocks),
        transcendentals=int(2 * n_blocks),
        bytes_accessed=int(l_pad * 1 + p.size * 4 + l_pad * 4),
    )

    out = pl.pallas_call(
        dummy_model_kernel,
        out_shape=jax.ShapeDtypeStruct((1, l_pad), jnp.float32),
        grid_spec=pltpu.PrefetchScalarGridSpec(
            num_scalar_prefetch=0,
            grid=(n_blocks,),
            in_specs=[
                pl.BlockSpec((1, blk), lambda i: (0, i)),          # int8 token lanes
                pl.BlockSpec((P_ROWS, P_COLS), lambda i: (0, 0)),  # packed params (fetched once)
            ],
            out_specs=pl.BlockSpec((1, blk), lambda i: (0, i)),
        ),
        compiler_params=pltpu.CompilerParams(
            dimension_semantics=("parallel",),
            vmem_limit_bytes=32 * 1024 * 1024,   # headroom for v5e's 16 MiB default
        ),
        cost_estimate=cost,
    )(tok, p)

    # Lanes are already (token, hidden)-interleaved: reshape only, no transpose.
    # The :L slice is elided by XLA whenever 2*B*S is a multiple of `blk`;
    # otherwise it is a small prefix copy (keep token counts lane-aligned at
    # large N to avoid it entirely).
    return out[0, :L].reshape(B, S, HIDDEN)


# ---------------------------------------------------------------------------
# Pure-JAX reference (matches PyTorch semantics: biased-variance LayerNorm)
# ---------------------------------------------------------------------------
def dummy_model_reference(x_tokens, params):
    h = params["emb"][x_tokens]
    h = h @ params["w1"].T + params["b1"]
    mean = h.mean(-1, keepdims=True)
    var = ((h - mean) ** 2).mean(-1, keepdims=True)
    h = (h - mean) / jnp.sqrt(var + EPS) * params["g1"] + params["be1"]
    h = h @ params["w2"].T + params["b2"]
    mean = h.mean(-1, keepdims=True)
    var = ((h - mean) ** 2).mean(-1, keepdims=True)
    h = (h - mean) / jnp.sqrt(var + EPS) * params["g2"] + params["be2"]
    return h @ params["wh"].T + params["bh"]


if __name__ == "__main__":
    key = jax.random.PRNGKey(0)
    pkey, xkey = jax.random.split(key)

    # TODO(synk): weight *values* of torch.manual_seed(123) are not reproducible in
    # JAX; shapes/architecture/forward semantics are identical (synthetic weights).
    params = init_params(pkey)

    B, S = 2, 8
    x = jax.random.randint(xkey, (B, S), 0, VOCAB, dtype=jnp.int32)

    logits = dummy_model_forward(x, params)
    logits = jax.block_until_ready(logits)

    ref = dummy_model_reference(x, params)
    assert logits.shape == (B, S, HIDDEN)
    assert jnp.allclose(logits, ref, atol=1e-5, rtol=1e-5), "mismatch vs reference"

    print("KERNEL_OK")
</pallas_src>

<mosaic_0001>
module attributes {stable_mosaic.version = 11 : i64} {
  func.func @dummy_model_kernel(%arg0: i32, %arg1: memref<1x256xi8, #tpu.memory_space<vmem>>, %arg2: memref<16x128xf32, #tpu.memory_space<vmem>>, %arg3: memref<1x256xf32, #tpu.memory_space<vmem>>) attributes {dimension_semantics = [#tpu.dimension_semantics<parallel>], iteration_bounds = array<i64: 1>, scalar_prefetch = 0 : i64, scratch_operands = 0 : i64, tpu.core_type = #tpu.core_type<tc>, window_params = [{transform_indices = @transform_0, window_bounds = array<i64: 1, 256>}, {pipeline_mode = #tpu.pipeline_mode<synchronous>, transform_indices = @transform_1, window_bounds = array<i64: 16, 128>}, {transform_indices = @transform_2, window_bounds = array<i64: 1, 256>}]} {
    %c0 = arith.constant 0 : index
    %c0_0 = arith.constant 0 : index
    %0 = vector.load %arg2[%c0, %c0_0] : memref<16x128xf32, #tpu.memory_space<vmem>>, vector<2x2xf32>
    %c2 = arith.constant 2 : index
    %c0_1 = arith.constant 0 : index
    %1 = vector.load %arg2[%c2, %c0_1] : memref<16x128xf32, #tpu.memory_space<vmem>>, vector<2x2xf32>
    %c4 = arith.constant 4 : index
    %c0_2 = arith.constant 0 : index
    %2 = vector.load %arg2[%c4, %c0_2] : memref<16x128xf32, #tpu.memory_space<vmem>>, vector<2x1xf32>
    %c4_3 = arith.constant 4 : index
    %c1 = arith.constant 1 : index
    %3 = vector.load %arg2[%c4_3, %c1] : memref<16x128xf32, #tpu.memory_space<vmem>>, vector<2x1xf32>
    %c4_4 = arith.constant 4 : index
    %c2_5 = arith.constant 2 : index
    %4 = vector.load %arg2[%c4_4, %c2_5] : memref<16x128xf32, #tpu.memory_space<vmem>>, vector<2x1xf32>
    %c6 = arith.constant 6 : index
    %c0_6 = arith.constant 0 : index
    %5 = vector.load %arg2[%c6, %c0_6] : memref<16x128xf32, #tpu.memory_space<vmem>>, vector<2x2xf32>
    %c8 = arith.constant 8 : index
    %c0_7 = arith.constant 0 : index
    %6 = vector.load %arg2[%c8, %c0_7] : memref<16x128xf32, #tpu.memory_space<vmem>>, vector<2x1xf32>
    %c8_8 = arith.constant 8 : index
    %c1_9 = arith.constant 1 : index
    %7 = vector.load %arg2[%c8_8, %c1_9] : memref<16x128xf32, #tpu.memory_space<vmem>>, vector<2x1xf32>
    %c8_10 = arith.constant 8 : index
    %c2_11 = arith.constant 2 : index
    %8 = vector.load %arg2[%c8_10, %c2_11] : memref<16x128xf32, #tpu.memory_space<vmem>>, vector<2x1xf32>
    %c10 = arith.constant 10 : index
    %c0_12 = arith.constant 0 : index
    %9 = vector.load %arg2[%c10, %c0_12] : memref<16x128xf32, #tpu.memory_space<vmem>>, vector<2x2xf32>
    %c12 = arith.constant 12 : index
    %c0_13 = arith.constant 0 : index
    %10 = vector.load %arg2[%c12, %c0_13] : memref<16x128xf32, #tpu.memory_space<vmem>>, vector<2x1xf32>
    %11 = vector.extract_strided_slice %1 {offsets = [0, 0], sizes = [2, 1], strides = [1, 1]} : vector<2x2xf32> to vector<2x1xf32>
    %12 = vector.extract_strided_slice %0 {offsets = [0, 0], sizes = [1, 2], strides = [1, 1]} : vector<2x2xf32> to vector<1x2xf32>
    %13 = vector.broadcast %11 : vector<2x1xf32> to vector<2x2xf32>
    %14 = vector.broadcast %12 : vector<1x2xf32> to vector<2x2xf32>
    %15 = arith.mulf %13, %14 : vector<2x2xf32>
    %16 = vector.broadcast %2 : vector<2x1xf32> to vector<2x2xf32>
    %17 = arith.addf %16, %15 : vector<2x2xf32>
    %18 = vector.extract_strided_slice %1 {offsets = [0, 1], sizes = [2, 1], strides = [1, 1]} : vector<2x2xf32> to vector<2x1xf32>
    %19 = vector.extract_strided_slice %0 {offsets = [1, 0], sizes = [1, 2], strides = [1, 1]} : vector<2x2xf32> to vector<1x2xf32>
    %20 = vector.broadcast %18 : vector<2x1xf32> to vector<2x2xf32>
    %21 = vector.broadcast %19 : vector<1x2xf32> to vector<2x2xf32>
    %22 = arith.mulf %20, %21 : vector<2x2xf32>
    %23 = arith.addf %17, %22 : vector<2x2xf32>
    %24 = vector.extract_strided_slice %23 {offsets = [0, 0], sizes = [1, 2], strides = [1, 1]} : vector<2x2xf32> to vector<1x2xf32>
    %25 = vector.extract_strided_slice %23 {offsets = [1, 0], sizes = [1, 2], strides = [1, 1]} : vector<2x2xf32> to vector<1x2xf32>
    %26 = arith.addf %24, %25 : vector<1x2xf32>
    %cst = arith.constant 5.000000e-01 : f32
    %27 = vector.broadcast %cst : f32 to vector<1x2xf32>
    %28 = arith.mulf %26, %27 : vector<1x2xf32>
    %29 = vector.broadcast %28 : vector<1x2xf32> to vector<2x2xf32>
    %30 = arith.subf %23, %29 : vector<2x2xf32>
    %31 = vector.extract_strided_slice %30 {offsets = [0, 0], sizes = [1, 2], strides = [1, 1]} : vector<2x2xf32> to vector<1x2xf32>
    %32 = vector.extract_strided_slice %30 {offsets = [0, 0], sizes = [1, 2], strides = [1, 1]} : vector<2x2xf32> to vector<1x2xf32>
    %33 = arith.mulf %31, %32 : vector<1x2xf32>
    %34 = vector.extract_strided_slice %30 {offsets = [1, 0], sizes = [1, 2], strides = [1, 1]} : vector<2x2xf32> to vector<1x2xf32>
    %35 = vector.extract_strided_slice %30 {offsets = [1, 0], sizes = [1, 2], strides = [1, 1]} : vector<2x2xf32> to vector<1x2xf32>
    %36 = arith.mulf %34, %35 : vector<1x2xf32>
    %37 = arith.addf %33, %36 : vector<1x2xf32>
    %cst_14 = arith.constant 5.000000e-01 : f32
    %38 = vector.broadcast %cst_14 : f32 to vector<1x2xf32>
    %39 = arith.mulf %37, %38 : vector<1x2xf32>
    %cst_15 = arith.constant 9.99999974E-6 : f32
    %40 = vector.broadcast %cst_15 : f32 to vector<1x2xf32>
    %41 = arith.addf %39, %40 : vector<1x2xf32>
    %42 = math.rsqrt %41 : vector<1x2xf32>
    %43 = vector.broadcast %42 : vector<1x2xf32> to vector<2x2xf32>
    %44 = arith.mulf %30, %43 : vector<2x2xf32>
    %45 = vector.broadcast %3 : vector<2x1xf32> to vector<2x2xf32>
    %46 = arith.mulf %44, %45 : vector<2x2xf32>
    %47 = vector.broadcast %4 : vector<2x1xf32> to vector<2x2xf32>
    %48 = arith.addf %46, %47 : vector<2x2xf32>
    %49 = vector.extract_strided_slice %5 {offsets = [0, 0], sizes = [2, 1], strides = [1, 1]} : vector<2x2xf32> to vector<2x1xf32>
    %50 = vector.extract_strided_slice %48 {offsets = [0, 0], sizes = [1, 2], strides = [1, 1]} : vector<2x2xf32> to vector<1x2xf32>
    %51 = vector.broadcast %49 : vector<2x1xf32> to vector<2x2xf32>
    %52 = vector.broadcast %50 : vector<1x2xf32> to vector<2x2xf32>
    %53 = arith.mulf %51, %52 : vector<2x2xf32>
    %54 = vector.broadcast %6 : vector<2x1xf32> to vector<2x2xf32>
    %55 = arith.addf %54, %53 : vector<2x2xf32>
    %56 = vector.extract_strided_slice %5 {offsets = [0, 1], sizes = [2, 1], strides = [1, 1]} : vector<2x2xf32> to vector<2x1xf32>
    %57 = vector.extract_strided_slice %48 {offsets = [1, 0], sizes = [1, 2], strides = [1, 1]} : vector<2x2xf32> to vector<1x2xf32>
    %58 = vector.broadcast %56 : vector<2x1xf32> to vector<2x2xf32>
    %59 = vector.broadcast %57 : vector<1x2xf32> to vector<2x2xf32>
    %60 = arith.mulf %58, %59 : vector<2x2xf32>
    %61 = arith.addf %55, %60 : vector<2x2xf32>
    %62 = vector.extract_strided_slice %61 {offsets = [0, 0], sizes = [1, 2], strides = [1, 1]} : vector<2x2xf32> to vector<1x2xf32>
    %63 = vector.extract_strided_slice %61 {offsets = [1, 0], sizes = [1, 2], strides = [1, 1]} : vector<2x2xf32> to vector<1x2xf32>
    %64 = arith.addf %62, %63 : vector<1x2xf32>
    %cst_16 = arith.constant 5.000000e-01 : f32
    %65 = vector.broadcast %cst_16 : f32 to vector<1x2xf32>
    %66 = arith.mulf %64, %65 : vector<1x2xf32>
    %67 = vector.broadcast %66 : vector<1x2xf32> to vector<2x2xf32>
    %68 = arith.subf %61, %67 : vector<2x2xf32>
    %69 = vector.extract_strided_slice %68 {offsets = [0, 0], sizes = [1, 2], strides = [1, 1]} : vector<2x2xf32> to vector<1x2xf32>
    %70 = vector.extract_strided_slice %68 {offsets = [0, 0], sizes = [1, 2], strides = [1, 1]} : vector<2x2xf32> to vector<1x2xf32>
    %71 = arith.mulf %69, %70 : vector<1x2xf32>
    %72 = vector.extract_strided_slice %68 {offsets = [1, 0], sizes = [1, 2], strides = [1, 1]} : vector<2x2xf32> to vector<1x2xf32>
    %73 = vector.extract_strided_slice %68 {offsets = [1, 0], sizes = [1, 2], strides = [1, 1]} : vector<2x2xf32> to vector<1x2xf32>
    %74 = arith.mulf %72, %73 : vector<1x2xf32>
    %75 = arith.addf %71, %74 : vector<1x2xf32>
    %cst_17 = arith.constant 5.000000e-01 : f32
    %76 = vector.broadcast %cst_17 : f32 to vector<1x2xf32>
    %77 = arith.mulf %75, %76 : vector<1x2xf32>
    %cst_18 = arith.constant 9.99999974E-6 : f32
    %78 = vector.broadcast %cst_18 : f32 to vector<1x2xf32>
    %79 = arith.addf %77, %78 : vector<1x2xf32>
    %80 = math.rsqrt %79 : vector<1x2xf32>
    %81 = vector.broadcast %80 : vector<1x2xf32> to vector<2x2xf32>
    %82 = arith.mulf %68, %81 : vector<2x2xf32>
    %83 = vector.broadcast %7 : vector<2x1xf32> to vector<2x2xf32>
    %84 = arith.mulf %82, %83 : vector<2x2xf32>
    %85 = vector.broadcast %8 : vector<2x1xf32> to vector<2x2xf32>
    %86 = arith.addf %84, %85 : vector<2x2xf32>
    %87 = vector.extract_strided_slice %9 {offsets = [0, 0], sizes = [2, 1], strides = [1, 1]} : vector<2x2xf32> to vector<2x1xf32>
    %88 = vector.extract_strided_slice %86 {offsets = [0, 0], sizes = [1, 2], strides = [1, 1]} : vector<2x2xf32> to vector<1x2xf32>
    %89 = vector.broadcast %87 : vector<2x1xf32> to vector<2x2xf32>
    %90 = vector.broadcast %88 : vector<1x2xf32> to vector<2x2xf32>
    %91 = arith.mulf %89, %90 : vector<2x2xf32>
    %92 = vector.broadcast %10 : vector<2x1xf32> to vector<2x2xf32>
    %93 = arith.addf %92, %91 : vector<2x2xf32>
    %94 = vector.extract_strided_slice %9 {offsets = [0, 1], sizes = [2, 1], strides = [1, 1]} : vector<2x2xf32> to vector<2x1xf32>
    %95 = vector.extract_strided_slice %86 {offsets = [1, 0], sizes = [1, 2], strides = [1, 1]} : vector<2x2xf32> to vector<1x2xf32>
    %96 = vector.broadcast %94 : vector<2x1xf32> to vector<2x2xf32>
    %97 = vector.broadcast %95 : vector<1x2xf32> to vector<2x2xf32>
    %98 = arith.mulf %96, %97 : vector<2x2xf32>
    %99 = arith.addf %93, %98 : vector<2x2xf32>
    %100 = vector.extract_strided_slice %99 {offsets = [0, 0], sizes = [1, 1], strides = [1, 1]} : vector<2x2xf32> to vector<1x1xf32>
    %101 = vector.extract_strided_slice %99 {offsets = [0, 1], sizes = [1, 1], strides = [1, 1]} : vector<2x2xf32> to vector<1x1xf32>
    %102 = vector.extract_strided_slice %99 {offsets = [1, 0], sizes = [1, 1], strides = [1, 1]} : vector<2x2xf32> to vector<1x1xf32>
    %103 = vector.extract_strided_slice %99 {offsets = [1, 1], sizes = [1, 1], strides = [1, 1]} : vector<2x2xf32> to vector<1x1xf32>
    %104 = tpu.iota {dimensions = array<i32: 1>} : vector<1x256xi32>
    %c1_i32 = arith.constant 1 : i32
    %105 = vector.broadcast %c1_i32 : i32 to vector<1x256xi32>
    %106 = arith.andi %104, %105 : vector<1x256xi32>
    %107 = arith.sitofp %106 : vector<1x256xi32> to vector<1x256xf32>
    %108 = arith.subf %102, %100 : vector<1x1xf32>
    %109 = vector.broadcast %108 : vector<1x1xf32> to vector<1x256xf32>
    %110 = arith.mulf %107, %109 : vector<1x256xf32>
    %111 = vector.broadcast %100 : vector<1x1xf32> to vector<1x256xf32>
    %112 = arith.addf %111, %110 : vector<1x256xf32>
    %113 = arith.subf %103, %101 : vector<1x1xf32>
    %114 = vector.broadcast %113 : vector<1x1xf32> to vector<1x256xf32>
    %115 = arith.mulf %107, %114 : vector<1x256xf32>
    %116 = vector.broadcast %101 : vector<1x1xf32> to vector<1x256xf32>
    %117 = arith.addf %116, %115 : vector<1x256xf32>
    %c0_19 = arith.constant 0 : index
    %c0_20 = arith.constant 0 : index
    %118 = vector.load %arg1[%c0_19, %c0_20] : memref<1x256xi8, #tpu.memory_space<vmem>>, vector<1x256xi8>
    %119 = arith.sitofp %118 : vector<1x256xi8> to vector<1x256xf32>
    %120 = arith.subf %117, %112 : vector<1x256xf32>
    %121 = arith.mulf %119, %120 : vector<1x256xf32>
    %122 = arith.addf %112, %121 : vector<1x256xf32>
    %c0_21 = arith.constant 0 : index
    %c0_22 = arith.constant 0 : index
    %123 = vector.load %arg3[%c0_21, %c0_22] : memref<1x256xf32, #tpu.memory_space<vmem>>, vector<1x256xf32>
    tpu.vector_store %arg3[%c0_21, %c0_22], %122 {strides = array<i32>} : memref<1x256xf32, #tpu.memory_space<vmem>>, vector<1x256xf32>,
    return
  }
  func.func @transform_0(%arg0: i32) -> (i32, i32) {
    %c0_i32 = arith.constant 0 : i32
    %c0_i32_0 = arith.constant 0 : i32
    return %c0_i32, %arg0 : i32, i32
  }
  func.func @transform_1(%arg0: i32) -> (i32, i32) {
    %c0_i32 = arith.constant 0 : i32
    %c0_i32_0 = arith.constant 0 : i32
    %c0_i32_1 = arith.constant 0 : i32
    return %c0_i32, %c0_i32_0 : i32, i32
  }
  func.func @transform_2(%arg0: i32) -> (i32, i32) {
    %c0_i32 = arith.constant 0 : i32
    %c0_i32_0 = arith.constant 0 : i32
    return %c0_i32, %arg0 : i32, i32
  }
}

</mosaic_0001>

<bundles_post_ra>
// kernel: tpu_custom_call.1
= control target key start
LH: loop header
LB: loop body
LE: loop exit
PB: predicated region body
PF: predicated region fallthrough
CT: control target
= control target key end

     0   :  { %7 = vsyncpa [#allocation3], 0  ;;  %s491_s0 = inlined_call_operand.hbm [shape: s8[1,256], index: 0, kind: input, shape index: {}]   ;;  %s492_s1 = inlined_call_operand.hbm [shape: f32[16,128], index: 1, kind: input, shape index: {}]   ;;  %s493_s2 = inlined_call_operand.hbm [shape: f32[1,256], index: 2, kind: output, shape index: {}]  }
   0x1   :  { %8 = vsyncpa [#allocation6], 0 }
   0x2   :  { %9 = vsyncpa [#allocation4], 0  ;;  %s395_s9 = smov [#allocation2]   ;;  %s396_s11 = smov [#allocation5]  }
   0x3   :  { %s16_s10 = sshll.u32 %s395_s9, 4  ;;  %s25_s12 = sshll.u32 %s396_s11, 4  ;;  %s17_s10 = int_to_ptr.vmem [resolvable:$true] %s16_s10  ;;  %s419_s12 = int_to_ptr.vmem [resolvable:$true] %s25_s12 }
   0x4   :  { %s323_s15 = scalar_lea.hbm %s491_s0, 32 }
   0x5   :  { %p324_p0 = scmp.ne.s32.totalorder %s491_s0, %s323_s15  ;;  %p327_p1 = scmp.lt.u32.totalorder %s323_s15, %s491_s0 }
   0x7   :  { %p329_p2 = pnand %p327_p1, %p324_p0 }
   0x9   :  { %332 = shalt.err (!%p329_p2)
}
   0xa   :  { %s333_s20 = scalar_lea.vmem %s17_s10, 32  ;;  %p338_p4 = scmp.lt.s32.totalorder %s17_s10, %s17_s10 }
   0xb   :  { %p334_p3 = scmp.ne.s32.totalorder %s17_s10, %s333_s20  ;;  %p339_p5 = scmp.lt.s32.totalorder %s333_s20, %s333_s20 }
   0xd   :  { %p340_p6 = por %p339_p5, %p338_p4 }
   0xf   :  { %p341_p7 = pnand %p340_p6, %p334_p3 }
  0x11   :  { %344 = shalt.err (!%p341_p7)
}
  0x12   :  { %19 = dma.hbm_to_vmem [thread:$0]  %s491_s0, 32, %s17_s10, [#allocation3]  }
  0x13   :  { %s345_s25 = scalar_lea.hbm %s492_s1, 256 }
  0x14   :  { %p346_p8 = scmp.ne.s32.totalorder %s492_s1, %s345_s25  ;;  %p349_p9 = scmp.lt.u32.totalorder %s345_s25, %s492_s1 }
  0x16   :  { %p351_p10 = pnand %p349_p9, %p346_p8 }
  0x18   :  { %354 = shalt.err (!%p351_p10)
}
  0x19   :  { %s355_s30 = scalar_lea.vmem %s419_s12, 256  ;;  %p360_p12 = scmp.lt.s32.totalorder %s419_s12, %s419_s12 }
  0x1a   :  { %p356_p11 = scmp.ne.s32.totalorder %s419_s12, %s355_s30  ;;  %p361_p13 = scmp.lt.s32.totalorder %s355_s30, %s355_s30 }
  0x1c   :  { %p362_p0 = por %p361_p13, %p360_p12 }
  0x1e   :  { %p363_p1 = pnand %p362_p0, %p356_p11 }
  0x20   :  { %366 = shalt.err (!%p363_p1)
}
  0x21   :  { %s397_s0 = smov 128   ;;  %s398_s3 = smov 8  }
  0x22   :  { %31 = dma.hbm_to_vmem [thread:$0]  %s492_s1, 256, %s419_s12, [#allocation6], %s397_s0, %s397_s0, %s398_s3  }
  0x23   :  { %389 = dma.done.wait [#allocation3], 32  }
  0x24   :  { %390 = vsyncadd [#allocation3], 4294967264 }
  0x25   :  { %391 = dma.done.wait [#allocation6], 256  }
  0x26   :  { %392 = vsyncadd [#allocation6], 4294967040  ;;  %v399_v0 = vmov 1   ;;  %v400_v1 = vmov 0   ;;  %v39_v2 = vld [vmem:[#allocation5 + $0x2] sm:$0x3]  ;;  %v50_v9 = vlaneseq }
  0x27   :  { %309 = vset.pattern.permute.xlu1 %v399_v0  ;;  %308 = vset.pattern.permute.xlu0 %v400_v1  ;;  %v40_v3 = vld [vmem:[#allocation5 + $0x4] sm:$0x3]  ;;  %v41_v4 = vld [vmem:[#allocation5 + $0x6] sm:$0x3]  ;;  %v401_v5 = vmov 2   ;;  %s403_s1 = smov [#allocation7]  }
  0x28   :  { %62 = vperm.xlu1 %309, %v39_v2   ;;  %47 = vperm.xlu0 %308, %v39_v2   ;;  %v42_v6 = vld [vmem:[#allocation5 + $0x8] sm:$0x3]  ;;  %v43_v7 = vld [vmem:[#allocation5 + $0xa] sm:$0x3]  ;;  %v44_v8 = vld [vmem:[#allocation5 + $0xc] sm:$0x3] }
  0x29   :  { %v455_v10 = vshrl.u32 %v50_v9, 7  ;;  %v38_v13 = vld [vmem:[#allocation5] sm:$0x3]  ;;  %s289_s6 = sshll.u32 %s403_s1, 4  ;;  %vm280_vm0 = vcmp.lt.s32.totalorder %v50_v9, 256  ;;  %s290_s6 = int_to_ptr.vmem [resolvable:$true] %s289_s6 }
  0x2a   :  { %s367_s7 = scalar_lea.vmem %s290_s6, 32  ;;  %p372_p3 = scmp.lt.s32.totalorder %s290_s6, %s290_s6 }
  0x2b   :  { %v458_v11 = vsub.s32 0, %v455_v10  ;;  %v461_v12 = vsub.s32 1, %v455_v10  ;;  %p368_p2 = scmp.ne.s32.totalorder %s290_s6, %s367_s7  ;;  %p373_p4 = scmp.lt.s32.totalorder %s367_s7, %s367_s7 }
  0x2c   :  { %95 = vperm.xlu1 %309, %v40_v3   ;;  %57 = vperm.xlu0 %308, %v40_v3  }
  0x2d   :  { %v68_v14 = vrot.slane %v38_v13, %v461_v12  ;;  %v53_v15 = vrot.slane %v38_v13, %v458_v11  ;;  %p374_p5 = por %p373_p4, %p372_p3 }
  0x2f   :  { %p375_p6 = pnand %p374_p5, %p368_p2 }
  0x30   :  { %311 = vset.pattern.permute.xlu1 %v400_v1  ;;  %310 = vset.pattern.permute.xlu0 %v401_v5 }
  0x31   :  { %106 = vperm.xlu1 %311, %v41_v4   ;;  %100 = vperm.xlu0 %310, %v40_v3  }
  0x35   :  { %116 = vperm.xlu1 %311, %v42_v6   ;;  %312 = vset.pattern.permute.xlu0 %v399_v0 }
  0x36   :  { %121 = vperm.xlu0 %312, %v41_v4  }
  0x39   :  { %313 = vset.pattern.permute.xlu1 %v399_v0 }
  0x3a   :  { %154 = vperm.xlu1 %313, %v42_v6   ;;  %315 = vset.pattern.permute.xlu0 %v400_v1 }
  0x3b   :  { %165 = vperm.xlu0 %315, %v43_v7  }
  0x3e   :  { %314 = vset.pattern.permute.xlu1 %v401_v5 }
  0x3f   :  { %159 = vperm.xlu1 %314, %v42_v6  }
  0x43   :  { %316 = vset.pattern.permute.xlu1 %v400_v1 }
  0x44   :  { %175 = vperm.xlu1 %316, %v44_v8  }
  0x48   :  { %317 = vset.pattern.permute.xlu1 %v399_v0 }
  0x49   :  { %180 = vperm.xlu1 %317, %v43_v7  }
  0xa7   :  { %v48_v16 = vpop.permute.xlu0 %47  ;;  %v63_v17 = vpop.permute.xlu1 %62 }
  0xa8   :  { %v69_v18 = vmul.f32 %v68_v14, %v63_v17  ;;  %v54_v19 = vmul.f32 %v53_v15, %v48_v16 }
  0xab   :  { %v58_v20 = vpop.permute.xlu0 %57  ;;  %v96_v35 = vpop.permute.xlu1 %95 }
  0xac   :  { %v60_v21 = vadd.f32 %v58_v20, %v54_v19 }
  0xae   :  { %v70_v22 = vadd.f32 %v69_v18, %v60_v21  ;;  %v190_v18 = vand.u32 127, %v50_v9 }
  0xb0   :  { %v72_v23 = vrot.slane %v70_v22, 1  ;;  %v101_v37 = vpop.permute.xlu0 %100  ;;  %v107_v39 = vpop.permute.xlu1 %106  ;;  %v191_v19 = vadd.s32 128, %v190_v18  ;;  %v192_v20 = vand.u32 1, %v190_v18 }
  0xb2   :  { %v74_v24 = vadd.f32 %v72_v23, %v70_v22  ;;  %v194_v21 = vcvt.s32.f32 %v192_v20  ;;  %v237_v23 = vld [vmem:[#allocation2] sm:$0x3] }
  0xb4   :  { %v75_v25 = vmul.f32 0.5, %v74_v24  ;;  %v117_v45 = vpop.permute.xlu1 %116 }
  0xb5   :  { %v122_v43 = vpop.permute.xlu0 %121 }
  0xb6   :  { %v79_v26 = vrot.slane %v75_v25, %v458_v11 }
  0xb8   :  { %v80_v27 = vsub.f32 %v70_v22, %v79_v26 }
  0xb9   :  { %v155_v59 = vpop.permute.xlu1 %154 }
  0xba   :  { %v81_v28 = vmul.f32 %v80_v27, %v80_v27  ;;  %v166_v4 = vpop.permute.xlu0 %165 }
  0xbc   :  { %v83_v29 = vrot.slane %v81_v28, 1 }
  0xbe   :  { %v85_v30 = vadd.f32 %v83_v29, %v81_v28  ;;  %v160_v60 = vpop.permute.xlu1 %159 }
  0xc0   :  { %v86_v31 = vmul.f32 0.5, %v85_v30  ;;  %v238_v30 = vunpack.c.0.s8 %v237_v23 }
  0xc2   :  { %v87_v32 = vadd.f32 1e-05, %v86_v31 }
  0xc3   :  { %v176_v1 = vpop.permute.xlu1 %175 }
  0xc4   :  { %319 = vrsqrt.f32 %v87_v32 }
  0xc8   :  { %v181_v7 = vpop.permute.xlu1 %180 }
  0xce   :  { %v320_v33 = vpop.eup %319 }
  0xcf   :  { %v92_v34 = vrot.slane %v320_v33, %v458_v11 }
  0xd1   :  { %v93_v36 = vmul.f32 %v92_v34, %v80_v27 }
  0xd3   :  { %v98_v38 = vmul.f32 %v96_v35, %v93_v36 }
  0xd5   :  { %v103_v40 = vadd.f32 %v101_v37, %v98_v38 }
  0xd7   :  { %v112_v41 = vrot.slane %v103_v40, %v458_v11  ;;  %v127_v42 = vrot.slane %v103_v40, %v461_v12  ;;  %v239_v40 = vcvt.s32.f32 %v238_v30 }
  0xd9   :  { %v113_v44 = vmul.f32 %v112_v41, %v107_v39  ;;  %v128_v47 = vmul.f32 %v127_v42, %v122_v43  ;;  %v402_v41 = vmov 1966171168  }
  0xda   :  { %v264_v42 = vunpack.c.l.s4 %v402_v41 }
  0xdb   :  { %v119_v46 = vadd.f32 %v117_v45, %v113_v44  ;;  %v254_v45 = vsub.s32 4, %v455_v10 }
  0xdd   :  { %v129_v48 = vadd.f32 %v128_v47, %v119_v46  ;;  %v265_v47 = vunpack.c.0.s8 %v264_v42 }
  0xdf   :  { %v131_v49 = vrot.slane %v129_v48, 1 }
  0xe1   :  { %v133_v50 = vadd.f32 %v131_v49, %v129_v48 }
  0xe3   :  { %v134_v51 = vmul.f32 0.5, %v133_v50 }
  0xe5   :  { %v138_v52 = vrot.slane %v134_v51, %v458_v11  ;;  %v268_v51 = vsub.s32 %v265_v47, %v455_v10 }
  0xe7   :  { %v139_v53 = vsub.f32 %v129_v48, %v138_v52 }
  0xe9   :  { %v140_v54 = vmul.f32 %v139_v53, %v139_v53 }
  0xeb   :  { %v142_v55 = vrot.slane %v140_v54, 1 }
  0xed   :  { %v144_v56 = vadd.f32 %v142_v55, %v140_v54 }
  0xef   :  { %v145_v57 = vmul.f32 0.5, %v144_v56 }
  0xf1   :  { %v146_v58 = vadd.f32 1e-05, %v145_v57 }
  0xf3   :  { %321 = vrsqrt.f32 %v146_v58 }
  0xfd   :  { %v322_v61 = vpop.eup %321 }
  0xfe   :  { %v151_v62 = vrot.slane %v322_v61, %v458_v11 }
 0x100   :  { %v152_v63 = vmul.f32 %v151_v62, %v139_v53 }
 0x102   :  { %v157_v2 = vmul.f32 %v155_v59, %v152_v63 }
 0x104   :  { %v162_v3 = vadd.f32 %v160_v60, %v157_v2 }
 0x106   :  { %v186_v5 = vrot.slane %v162_v3, %v461_v12  ;;  %v171_v6 = vrot.slane %v162_v3, %v458_v11  ;;  %v193_v12 = vand.u32 1, %v191_v19 }
 0x108   :  { %v172_v8 = vmul.f32 %v171_v6, %v166_v4  ;;  %v187_v13 = vmul.f32 %v186_v5, %v181_v7  ;;  %v195_v22 = vcvt.s32.f32 %v193_v12 }
 0x10a   :  { %v178_v14 = vadd.f32 %v176_v1, %v172_v8 }
 0x10c   :  { %v188_v15 = vadd.f32 %v187_v13, %v178_v14 }
 0x10e   :  { %v197_v16 = vrot.slane %v188_v15, 7 }
 0x110   :  { %v199_v17 = vsub.f32 %v188_v15, %v197_v16 }
 0x112   :  { %220 = vperm.xlu1 %317, %v199_v17   ;;  %202 = vperm.xlu0 %315, %v199_v17  }
 0x116   :  { %226 = vperm.xlu1 %317, %v188_v15   ;;  %208 = vperm.xlu0 %315, %v188_v15  }
 0x11a   :  { %318 = vset.pattern.permute.xlu0 %v399_v0 }
 0x191   :  { %v221_v24 = vpop.permute.xlu1 %220  ;;  %v203_v25 = vpop.permute.xlu0 %202 }
 0x192   :  { %v223_v26 = vmul.f32 %v221_v24, %v194_v21  ;;  %v224_v27 = vmul.f32 %v221_v24, %v195_v22  ;;  %v205_v28 = vmul.f32 %v203_v25, %v194_v21  ;;  %v206_v29 = vmul.f32 %v203_v25, %v195_v22 }
 0x194   :  { %v231_v31 = vrot.slane %v223_v26, 1  ;;  %v232_v32 = vrot.slane %v224_v27, 1  ;;  %v213_v33 = vrot.slane %v205_v28, 1  ;;  %v214_v34 = vrot.slane %v206_v29, 1 }
 0x195   :  { %v227_v0 = vpop.permute.xlu1 %226  ;;  %v209_v35 = vpop.permute.xlu0 %208 }
 0x196   :  { %v235_v36 = vadd.f32 %v231_v31, %v227_v0  ;;  %v236_v37 = vadd.f32 %v232_v32, %v227_v0  ;;  %v217_v38 = vadd.f32 %v213_v33, %v209_v35  ;;  %v218_v39 = vadd.f32 %v214_v34, %v209_v35 }
 0x198   :  { %v240_v43 = vsub.f32 %v235_v36, %v217_v38  ;;  %v241_v44 = vsub.f32 %v236_v37, %v218_v39 }
 0x19a   :  { %v244_v46 = vcombine.low %v240_v43, %v241_v44 }
 0x19c   :  { %v246_v48 = vmul.f32 %v244_v46, %v239_v40 }
 0x19e   :  { %v251_v49 = vrot.slane %v246_v48, %v458_v11  ;;  %v255_v50 = vrot.slane %v246_v48, %v254_v45 }
 0x1a0   :  { %v258_v52 = vadd.f32 %v251_v49, %v217_v38  ;;  %v259_v53 = vadd.f32 %v255_v50, %v218_v39 }
 0x1a2   :  { %v262_v54 = vcombine.low %v258_v52, %v259_v53 }
 0x1a4   :  { %v269_v55 = vrot.slane %v262_v54, %v268_v51 }
 0x1a6   :  { %v276_v56 = vrot.slane %v269_v55, %v268_v51 }
 0x1a8   :  { %282 = vst.msk [vmem:[#allocation7] sm:$0x3] %vm280_vm0, %v276_v56 }
 0x1a9   :  { %378 = shalt.err (!%p375_p6)
}
 0x1aa   :  { %s379_s10 = scalar_lea.hbm %s493_s2, 32 }
 0x1ab   :  { %p380_p7 = scmp.ne.s32.totalorder %s493_s2, %s379_s10  ;;  %p383_p8 = scmp.lt.u32.totalorder %s379_s10, %s493_s2 }
 0x1ad   :  { %p385_p9 = pnand %p383_p8, %p380_p7 }
 0x1af   :  { %388 = shalt.err (!%p385_p9)
}
 0x1b0   :  { %292 = dma.vmem_to_hbm [thread:$0]  %s290_s6, 32, %s493_s2, [#allocation4]  }
 0x1b1   :  { %393 = dma.done.wait [#allocation4], 32  }
 0x1b2   :  { %394 = vsyncadd [#allocation4], 4294967264 }
 0x1b3   :  { %296 = vsyncpa [#allocation3], 1 }
 0x1b4   :  { %297 = vsyncpa [#allocation6], 1 }
 0x1b5   :  { %298 = vsyncpa [#allocation4], 1 }

</bundles_post_ra>
